<compile_context>
chip_gen: v6e
topology: v6e:2x2x1
jax: 0.10.0
libtpu: 0.0.40
codegen_flags: <defaults>
</compile_context>

<pallas_src>
import jax
import jax.numpy as jnp
from jax.experimental import pallas as pl
from jax.experimental.pallas import tpu as pltpu


def _key_kernel(x_ref, wt_ref, o_ref):
    # x_ref : (tm, Din)   -- tile of flattened input rows
    # wt_ref: (Din, Da)   -- full weight (pre-transposed), VMEM resident
    # o_ref : (tm, Da)
    o_ref[...] = jnp.dot(
        x_ref[...], wt_ref[...],
        preferred_element_type=jnp.float32,
    ).astype(o_ref.dtype)


def key_forward_pallas(x, w, *, block_m=512):
    """Bias-free linear: y = x @ w.T.

    x: (..., Din)  (e.g. (B, S, Din))
    w: (Da, Din)   (PyTorch nn.Linear weight layout, bias=False)
    returns: (..., Da)
    """
    Da, Din = w.shape
    lead_shape = x.shape[:-1]
    M = 1
    for d in lead_shape:
        M *= d
    x2 = x.reshape(M, Din)

    # Choose a row tile: multiple of 8 (sublane), capped at block_m.
    tm = min(block_m, M)
    tm = max(8, -(-tm // 8) * 8)
    Mp = -(-M // tm) * tm
    if Mp != M:
        x2 = jnp.pad(x2, ((0, Mp - M), (0, 0)))

    wt = jnp.transpose(w)  # (Din, Da): row-major operand for the MXU

    out = pl.pallas_call(
        _key_kernel,
        out_shape=jax.ShapeDtypeStruct((Mp, Da), x.dtype),
        grid_spec=pltpu.PrefetchScalarGridSpec(
            num_scalar_prefetch=0,
            grid=(Mp // tm,),
            in_specs=[
                pl.BlockSpec((tm, Din), lambda i: (i, 0)),
                # Constant block index -> weight stays resident in VMEM.
                pl.BlockSpec((Din, Da), lambda i: (0, 0)),
            ],
            out_specs=pl.BlockSpec((tm, Da), lambda i: (i, 0)),
        ),
        compiler_params=pltpu.CompilerParams(
            dimension_semantics=("parallel",)),
    )(x2, wt)

    return out[:M].reshape(*lead_shape, Da)


def reference_forward(x, w):
    """Pure-JAX replica of the PyTorch Key.forward (nn.Linear, bias=False)."""
    return x @ w.T


if __name__ == "__main__":
    B, S = 2, 8
    dim_input, dim_attn = 32, 16

    key = jax.random.PRNGKey(0)
    k_x, k_w = jax.random.split(key)
    x = jax.random.normal(k_x, (B, S, dim_input), jnp.float32)
    # PyTorch nn.Linear weight shape: (out_features, in_features)
    w = jax.random.normal(k_w, (dim_attn, dim_input), jnp.float32) * 0.1

    out = key_forward_pallas(x, w)
    out = jax.block_until_ready(out)

    ref = reference_forward(x, w)
    assert out.shape == (B, S, dim_attn)
    assert jnp.allclose(out, ref, atol=1e-5, rtol=1e-5), (
        f"max err {jnp.max(jnp.abs(out - ref))}")

    print("KERNEL_OK")
</pallas_src>

<mosaic_0001>
module attributes {stable_mosaic.version = 11 : i64} {
  func.func @_key_kernel(%arg0: i32, %arg1: memref<16x32xf32, #tpu.memory_space<vmem>>, %arg2: memref<32x16xf32, #tpu.memory_space<vmem>>, %arg3: memref<16x16xf32, #tpu.memory_space<vmem>>) attributes {dimension_semantics = [#tpu.dimension_semantics<parallel>], iteration_bounds = array<i64: 1>, scalar_prefetch = 0 : i64, scratch_operands = 0 : i64, tpu.core_type = #tpu.core_type<tc>, window_params = [{transform_indices = @transform_0, window_bounds = array<i64: 16, 32>}, {pipeline_mode = #tpu.pipeline_mode<synchronous>, transform_indices = @transform_1, window_bounds = array<i64: 32, 16>}, {transform_indices = @transform_2, window_bounds = array<i64: 16, 16>}]} {
    %c0 = arith.constant 0 : index
    %c0_0 = arith.constant 0 : index
    %0 = vector.load %arg1[%c0, %c0_0] : memref<16x32xf32, #tpu.memory_space<vmem>>, vector<16x32xf32>
    %c0_1 = arith.constant 0 : index
    %c0_2 = arith.constant 0 : index
    %1 = vector.load %arg2[%c0_1, %c0_2] : memref<32x16xf32, #tpu.memory_space<vmem>>, vector<32x16xf32>
    %cst = arith.constant dense<0.000000e+00> : vector<16x16xf32>
    %2 = tpu.matmul %0, %1, %cst {dimension_numbers = #tpu.dot_dimension_numbers<[1], [0], [0], [1], [0, 0, 1, 1], [], []>} : vector<16x32xf32>, vector<32x16xf32>, vector<16x16xf32> -> vector<16x16xf32>
    %c0_3 = arith.constant 0 : index
    %c0_4 = arith.constant 0 : index
    %3 = vector.load %arg3[%c0_3, %c0_4] : memref<16x16xf32, #tpu.memory_space<vmem>>, vector<16x16xf32>
    tpu.vector_store %arg3[%c0_3, %c0_4], %2 {strides = array<i32>} : memref<16x16xf32, #tpu.memory_space<vmem>>, vector<16x16xf32>,
    return
  }
  func.func @transform_0(%arg0: i32) -> (i32, i32) {
    %c0_i32 = arith.constant 0 : i32
    %c0_i32_0 = arith.constant 0 : i32
    return %arg0, %c0_i32 : i32, i32
  }
  func.func @transform_1(%arg0: i32) -> (i32, i32) {
    %c0_i32 = arith.constant 0 : i32
    %c0_i32_0 = arith.constant 0 : i32
    %c0_i32_1 = arith.constant 0 : i32
    return %c0_i32, %c0_i32_0 : i32, i32
  }
  func.func @transform_2(%arg0: i32) -> (i32, i32) {
    %c0_i32 = arith.constant 0 : i32
    %c0_i32_0 = arith.constant 0 : i32
    return %arg0, %c0_i32 : i32, i32
  }
}

</mosaic_0001>

<bundles_post_ra>
// kernel: tpu_custom_call.1
= control target key start
LH: loop header
LB: loop body
LE: loop exit
PB: predicated region body
PF: predicated region fallthrough
CT: control target
= control target key end

     0   :  { %vm18_vm0 = vcmask 261120   ;;  %s202_s0 = inlined_call_operand.vmem [shape: f32[16,32], index: 0, kind: input, shape index: {}]   ;;  %s203_s1 = inlined_call_operand.vmem [shape: f32[32,16], index: 1, kind: input, shape index: {}]   ;;  %s204_s2 = inlined_call_operand.hbm [shape: f32[16,16], index: 2, kind: output, shape index: {}]  }
   0x1   :  { %v17_v0 = vld [vmem:[%s203_s1 + $0x18] sm:$0xff]  ;;  %v16_v1 = vld [vmem:[%s203_s1 + $0x10] sm:$0xff]  ;;  %v12_v2 = vld [vmem:[%s202_s0] sm:$0xff] }
   0x2   :  { %127 = vmatprep.subr.mxu0 %v17_v0  ;;  %v15_v3 = vld [vmem:[%s203_s1 + $0x8] sm:$0xff]  ;;  %135 = vmatprep.mubr.msk.f32.mxu0 %vm18_vm0, %v12_v2 }
   0x3   :  { %128 = vmatpush3.msra.mxu0 %v17_v0 }
   0x4   :  { %7 = vsyncpa [#allocation3], 0  ;;  %129 = vmatprep.subr.mxu0 %v16_v1  ;;  %v14_v4 = vld [vmem:[%s203_s1] sm:$0xff]  ;;  %v13_v5 = vld [vmem:[%s202_s0 + $0x8] sm:$0xff]  ;;  %s163_s21 = smov [#allocation2]   ;;  %vm100_vm1 = vcmask 130048  }
   0x5   :  { %130 = vmatpush3.msra.mxu0 %v16_v1  ;;  %s108_s22 = sshll.u32 %s163_s21, 4  ;;  %s109_s22 = int_to_ptr.vmem [resolvable:$true] %s108_s22 }
   0x6   :  { %131 = vmatprep.subr.mxu0 %v15_v3  ;;  %s141_s23 = scalar_lea.vmem %s109_s22, 256  ;;  %p146_p1 = scmp.lt.s32.totalorder %s109_s22, %s109_s22 }
   0x7   :  { %132 = vmatpush3.msra.mxu0 %v15_v3  ;;  %p142_p0 = scmp.ne.s32.totalorder %s109_s22, %s141_s23  ;;  %p147_p2 = scmp.lt.s32.totalorder %s141_s23, %s141_s23 }
   0x8   :  { %133 = vmatprep.subr.mxu0 %v14_v4 }
   0x9   :  { %134 = vmatpush3.msra.mxu0 %v14_v4  ;;  %p148_p3 = por %p147_p2, %p146_p1 }
   0xa   :  { %136 = vmatmul.mubr.msk.f32.vlgmr.msra.gmra.mxu0 %vm18_vm0, %v13_v5 }
   0xb   :  { %p149_p4 = pnand %p148_p3, %p142_p0 }
  0xca   :  { %v137_v6 = vpop.f32.mrf.mxu0 }
  0xcb   :  { %102 = vst.msk [vmem:[#allocation2 + $0x8] sm:$0xff] %vm100_vm1, %v137_v6 }
  0xcc   :  { %v91_v7 = vpop.f32.mrf.mxu0 }
  0xcd   :  { %101 = vst.msk [vmem:[#allocation2] sm:$0xff] %vm100_vm1, %v91_v7 }
  0xce   :  { %152 = shalt.err (!%p149_p4)
}
  0xcf   :  { %s164_s1 = smov 128   ;;  %s165_s0 = smov 8  }
  0xd0   :  { %114 = dma.vmem_to_hbm [thread:$0]  %s109_s22, 256, %s204_s2, [#allocation3], %s164_s1, %s164_s1, %s165_s0  }
  0xd1   :  { %161 = dma.done.wait [#allocation3], 256  }
  0xd2   :  { %162 = vsyncadd [#allocation3], 4294967040 }
  0xd3   :  { %118 = vsyncpa [#allocation3], 1 }

</bundles_post_ra>
